<compile_context>
chip_gen: v7x
topology: tpu7x:2x2x1
jax: 0.10.0
libtpu: 0.0.40
codegen_flags: <defaults>
</compile_context>

<pallas_src>
import functools
import math

import jax
import jax.numpy as jnp
from jax.experimental import pallas as pl
from jax.experimental.pallas import tpu as pltpu


# ---------------------------------------------------------------------------
# Pallas kernels
# ---------------------------------------------------------------------------
def _matmul_kernel(a_ref, b_ref, o_ref, acc_ref):
    @pl.when(pl.program_id(2) == 0)
    def _():
        acc_ref[...] = jnp.zeros_like(acc_ref)

    acc_ref[...] += jnp.dot(a_ref[...], b_ref[...],
                            preferred_element_type=jnp.float32)

    @pl.when(pl.program_id(2) == pl.num_programs(2) - 1)
    def _():
        o_ref[...] = acc_ref[...].astype(o_ref.dtype)


def _conv_kernel(x_ref, w_ref, o_ref, acc_ref, *, kw_taps, stride, ow,
                 w_resident):
    """Direct KxK conv: one padded input row per grid step, KW taps unrolled."""
    kh = pl.program_id(2)

    @pl.when(kh == 0)
    def _():
        acc_ref[...] = jnp.zeros_like(acc_ref)

    for kw in range(kw_taps):
        lhs = x_ref[0, kw % stride, kw // stride:kw // stride + ow, :]  # (OW,Cin)
        rhs = w_ref[kh * kw_taps + kw] if w_resident else w_ref[kw]     # (Cin,Cout)
        acc_ref[...] += jnp.dot(lhs, rhs, preferred_element_type=jnp.float32)

    @pl.when(kh == pl.num_programs(2) - 1)
    def _():
        o_ref[0, 0] = acc_ref[...].astype(o_ref.dtype)


def _gn_scale_shift(s1, s2, mgt, gamma, beta, eps, cnt):
    """Turn per-channel sums into per-channel affine (scale, shift).

    s1/s2: (1, C) sum / sum-sq.  mgt: (G, C) one-hot group map.  Small MXU
    dots gather per-group stats and scatter them back to channels.
    """
    mean_g = jax.lax.dot_general(s1, mgt, (((1,), (1,)), ((), ())),
                                 preferred_element_type=jnp.float32) / cnt
    msq_g = jax.lax.dot_general(s2, mgt, (((1,), (1,)), ((), ())),
                                preferred_element_type=jnp.float32) / cnt
    var_g = jnp.maximum(msq_g - mean_g * mean_g, 0.0)      # biased (PyTorch)
    inv_g = jax.lax.rsqrt(var_g + eps)
    mean_c = jnp.dot(mean_g, mgt, preferred_element_type=jnp.float32)
    inv_c = jnp.dot(inv_g, mgt, preferred_element_type=jnp.float32)
    scale = inv_c * gamma                                   # (1, C)
    shift = beta - mean_c * scale
    return scale, shift


def _gn_onepass_kernel(*refs, eps, relu, has_res, cnt):
    """Fused GroupNorm (+residual)(+ReLU): whole (HW, C) slab in one grid step."""
    if has_res:
        x_ref, r_ref, g_ref, b_ref, mgt_ref, o_ref = refs
    else:
        x_ref, g_ref, b_ref, mgt_ref, o_ref = refs
        r_ref = None
    x = x_ref[0].astype(jnp.float32)                        # (HW, C)
    s1 = jnp.sum(x, axis=0, keepdims=True)
    s2 = jnp.sum(x * x, axis=0, keepdims=True)
    scale, shift = _gn_scale_shift(s1, s2, mgt_ref[...], g_ref[...],
                                   b_ref[...], eps, cnt)
    y = x * scale + shift
    if has_res:
        y = y + r_ref[0].astype(jnp.float32)
    if relu:
        y = jnp.maximum(y, 0.0)
    o_ref[0] = y.astype(o_ref.dtype)


def _gn_twopass_kernel(*refs, eps, relu, has_res, cnt):
    """Fused GroupNorm for large HW: grid (N, 2, HW_tiles).

    Phase 0 accumulates per-channel sum / sum-sq into a VMEM scratch; phase 1
    applies affine(+residual)(+relu) tile by tile.
    """
    if has_res:
        x_ref, r_ref, g_ref, b_ref, mgt_ref, o_ref, s_ref = refs
    else:
        x_ref, g_ref, b_ref, mgt_ref, o_ref, s_ref = refs
        r_ref = None
    phase = pl.program_id(1)
    t = pl.program_id(2)

    @pl.when((phase == 0) & (t == 0))
    def _():
        s_ref[...] = jnp.zeros_like(s_ref)

    @pl.when(phase == 0)
    def _():
        x = x_ref[0].astype(jnp.float32)                    # (THW, C)
        s_ref[0:1, :] += jnp.sum(x, axis=0, keepdims=True)
        s_ref[1:2, :] += jnp.sum(x * x, axis=0, keepdims=True)

    @pl.when(phase == 1)
    def _():
        x = x_ref[0].astype(jnp.float32)
        scale, shift = _gn_scale_shift(s_ref[0:1, :], s_ref[1:2, :],
                                       mgt_ref[...], g_ref[...], b_ref[...],
                                       eps, cnt)
        y = x * scale + shift
        if has_res:
            y = y + r_ref[0].astype(jnp.float32)
        if relu:
            y = jnp.maximum(y, 0.0)
        o_ref[0] = y.astype(o_ref.dtype)


def _avgpool2_kernel(x_ref, o_ref):
    x = x_ref[...].astype(jnp.float32)                      # (2, OW, 2, C)
    y = x[0] + x[1]                                         # (OW, 2, C)
    o_ref[0] = ((y[:, 0, :] + y[:, 1, :]) * 0.25).astype(o_ref.dtype)


def _maxpool3_kernel(xe_ref, xo_ref, o_ref, acc_ref, *, ow):
    kh = pl.program_id(2)

    @pl.when(kh == 0)
    def _():
        acc_ref[...] = jnp.full_like(acc_ref, jnp.finfo(jnp.float32).min)

    e = xe_ref[0, 0].astype(jnp.float32)                    # (OW + 1, C)
    o = xo_ref[0, 0].astype(jnp.float32)                    # (OW + 1, C)
    row = jnp.maximum(jnp.maximum(e[:ow, :], o[:ow, :]), e[1:ow + 1, :])
    acc_ref[...] = jnp.maximum(acc_ref[...], row)

    @pl.when(kh == pl.num_programs(2) - 1)
    def _():
        o_ref[0, 0] = acc_ref[...].astype(o_ref.dtype)


# ---------------------------------------------------------------------------
# helpers
# ---------------------------------------------------------------------------
def _pick_tile(dim, candidates):
    for t in candidates:
        if dim % t == 0:
            return t
    return dim


def _pick_hw_tile(hw, c):
    limit = 1 << 18                       # ~256K elems (~512 KiB bf16) / block
    if hw * c <= limit or hw % 8 != 0:
        return hw
    t = min(hw, max(8, (limit // c) // 8 * 8))
    while t >= 8:
        if hw % t == 0:
            return t
        t -= 8
    return hw


# ---------------------------------------------------------------------------
# Pallas wrappers (jitted so identical shapes reuse compiled kernels)
# ---------------------------------------------------------------------------
@jax.jit
def _matmul(a, b):
    """(M,K)@(K,N) bf16 -> bf16 via tiled MXU kernel; no zero padding."""
    M, K = a.shape
    _, N = b.shape
    TM = M if M <= 256 else _pick_tile(M, (256, 128, 64, 32, 16, 8))
    TN = N if N <= 512 else _pick_tile(N, (512, 256, 128))
    TK = K if K <= 1024 else _pick_tile(K, (1024, 512, 256, 128))
    return pl.pallas_call(
        _matmul_kernel,
        out_shape=jax.ShapeDtypeStruct((M, N), jnp.bfloat16),
        grid_spec=pltpu.PrefetchScalarGridSpec(
            num_scalar_prefetch=0,
            grid=(M // TM, N // TN, K // TK),
            in_specs=[pl.BlockSpec((TM, TK), lambda i, j, k: (i, k)),
                      pl.BlockSpec((TK, TN), lambda i, j, k: (k, j))],
            out_specs=pl.BlockSpec((TM, TN), lambda i, j, k: (i, j)),
            scratch_shapes=[pltpu.VMEM((TM, TN), jnp.float32)]),
        compiler_params=pltpu.CompilerParams(
            dimension_semantics=("parallel", "parallel", "arbitrary")),
    )(a, b)


@functools.partial(jax.jit, static_argnames=("stride",))
def conv1x1(x, w, *, stride=1):
    """1x1 conv on NHWC: matmul against prepacked (Cin, Cout) bf16 weight."""
    if stride > 1:
        x = x[:, ::stride, ::stride, :]
    N, H, W, Cin = x.shape
    y = _matmul(x.reshape(N * H * W, Cin), w)
    return y.reshape(N, H, W, w.shape[-1])


@functools.partial(jax.jit, static_argnames=("stride", "padding", "kh", "kw"))
def conv2d_spatial(x, w, *, stride, padding, kh, kw):
    """KxK conv (NHWC, bias-free) via the direct-conv Pallas kernel.

    The padded input is column-phase split by `stride` (a free reshape for
    stride 1, one ~1x copy for strided convs) so every tap inside the kernel
    is a static in-VMEM slice -- no im2col patches ever hit HBM.
    """
    N, H, W, Cin = x.shape
    Cout = w.shape[-1]
    OH = (H + 2 * padding - kh) // stride + 1
    OW = (W + 2 * padding - kw) // stride + 1
    PW = (kw - 1) // stride + OW          # per-phase width needed by the taps
    xp = jnp.pad(x, ((0, 0), (padding, padding), (padding, padding), (0, 0)))
    Hp, Wp = H + 2 * padding, W + 2 * padding
    extra_w = max(0, stride * PW - Wp)
    if extra_w:
        xp = jnp.pad(xp, ((0, 0), (0, 0), (0, extra_w), (0, 0)))
    if stride == 1:
        xph = xp[:, :, None, :, :]                            # free reshape
    else:
        xph = jnp.stack([xp[:, :, ph::stride, :][:, :, :PW, :]
                         for ph in range(stride)], axis=2)
    xph = xph.reshape(N * Hp, stride, PW, Cin)

    # keep whole weight resident in VMEM if it is small (static shape check)
    w_bytes = kh * kw * Cin * Cout * 2
    resident = w_bytes <= 4 * 1024 * 1024
    if resident:
        w_spec = pl.BlockSpec((kh * kw, Cin, Cout), lambda n, i, k: (0, 0, 0))
    else:
        w_spec = pl.BlockSpec((kw, Cin, Cout), lambda n, i, k: (k, 0, 0))

    return pl.pallas_call(
        functools.partial(_conv_kernel, kw_taps=kw, stride=stride, ow=OW,
                          w_resident=resident),
        out_shape=jax.ShapeDtypeStruct((N, OH, OW, Cout), jnp.bfloat16),
        grid_spec=pltpu.PrefetchScalarGridSpec(
            num_scalar_prefetch=0,
            grid=(N, OH, kh),
            in_specs=[pl.BlockSpec(
                (1, stride, PW, Cin),
                lambda n, i, k: (n * Hp + i * stride + k, 0, 0, 0)),
                w_spec],
            out_specs=pl.BlockSpec((1, 1, OW, Cout),
                                   lambda n, i, k: (n, i, 0, 0)),
            scratch_shapes=[pltpu.VMEM((OW, Cout), jnp.float32)]),
        compiler_params=pltpu.CompilerParams(
            dimension_semantics=("parallel", "parallel", "arbitrary")),
    )(xph, w)


@functools.partial(jax.jit, static_argnames=("num_groups", "relu"))
def group_norm(x, gamma, beta, residual=None, *, num_groups, relu):
    """Fused GroupNorm (+ residual add) (+ ReLU) on NHWC."""
    N, H, W, C = x.shape
    G = num_groups
    assert C % G == 0
    HW = H * W
    THW = _pick_hw_tile(HW, C)
    has_res = residual is not None
    cnt = float(HW * (C // G))

    x2 = x.reshape(N, HW, C)
    mgt = (jnp.arange(C)[None, :] // (C // G)
           == jnp.arange(G)[:, None]).astype(jnp.float32)            # (G, C)
    gam = gamma.reshape(1, C).astype(jnp.float32)
    bet = beta.reshape(1, C).astype(jnp.float32)

    if THW == HW:
        # single pass: whole (HW, C) slab per image, x read exactly once
        inputs = [x2]
        in_specs = [pl.BlockSpec((1, HW, C), lambda n: (n, 0, 0))]
        if has_res:
            inputs.append(residual.reshape(N, HW, C))
            in_specs.append(pl.BlockSpec((1, HW, C), lambda n: (n, 0, 0)))
        inputs += [gam, bet, mgt]
        in_specs += [pl.BlockSpec((1, C), lambda n: (0, 0)),
                     pl.BlockSpec((1, C), lambda n: (0, 0)),
                     pl.BlockSpec((G, C), lambda n: (0, 0))]
        out = pl.pallas_call(
            functools.partial(_gn_onepass_kernel, eps=1e-5, relu=relu,
                              has_res=has_res, cnt=cnt),
            out_shape=jax.ShapeDtypeStruct((N, HW, C), x.dtype),
            grid_spec=pltpu.PrefetchScalarGridSpec(
                num_scalar_prefetch=0,
                grid=(N,),
                in_specs=in_specs,
                out_specs=pl.BlockSpec((1, HW, C), lambda n: (n, 0, 0))),
            compiler_params=pltpu.CompilerParams(
                dimension_semantics=("parallel",)),
        )(*inputs)
    else:
        # large HW: 2-phase HW-tiled grid with per-channel stats in VMEM scratch
        inputs = [x2]
        in_specs = [pl.BlockSpec((1, THW, C), lambda n, p, t: (n, t, 0))]
        if has_res:
            inputs.append(residual.reshape(N, HW, C))
            in_specs.append(pl.BlockSpec((1, THW, C), lambda n, p, t: (n, t, 0)))
        inputs += [gam, bet, mgt]
        in_specs += [pl.BlockSpec((1, C), lambda n, p, t: (0, 0)),
                     pl.BlockSpec((1, C), lambda n, p, t: (0, 0)),
                     pl.BlockSpec((G, C), lambda n, p, t: (0, 0))]
        out = pl.pallas_call(
            functools.partial(_gn_twopass_kernel, eps=1e-5, relu=relu,
                              has_res=has_res, cnt=cnt),
            out_shape=jax.ShapeDtypeStruct((N, HW, C), x.dtype),
            grid_spec=pltpu.PrefetchScalarGridSpec(
                num_scalar_prefetch=0,
                grid=(N, 2, HW // THW),
                in_specs=in_specs,
                out_specs=pl.BlockSpec((1, THW, C), lambda n, p, t: (n, t, 0)),
                scratch_shapes=[pltpu.VMEM((2, C), jnp.float32)]),
            compiler_params=pltpu.CompilerParams(
                dimension_semantics=("parallel", "arbitrary", "arbitrary")),
        )(*inputs)
    return out.reshape(N, H, W, C)


@jax.jit
def avg_pool2(x):
    """F.avg_pool2d(x, 2) on NHWC (one output row per grid step)."""
    N, H, W, C = x.shape
    assert H % 2 == 0 and W % 2 == 0
    OH, OW = H // 2, W // 2
    xr = x.reshape(N * H, OW, 2, C)
    out = pl.pallas_call(
        _avgpool2_kernel,
        out_shape=jax.ShapeDtypeStruct((N * OH, OW, C), x.dtype),
        grid_spec=pltpu.PrefetchScalarGridSpec(
            num_scalar_prefetch=0,
            grid=(N * OH,),
            in_specs=[pl.BlockSpec((2, OW, 2, C), lambda i: (i, 0, 0, 0))],
            out_specs=pl.BlockSpec((1, OW, C), lambda i: (i, 0, 0))),
        compiler_params=pltpu.CompilerParams(
            dimension_semantics=("parallel",)),
    )(xr)
    return out.reshape(N, OH, OW, C)


@jax.jit
def max_pool3(x):
    """MaxPool2d(kernel=3, stride=2, padding=1) on NHWC."""
    N, H, W, C = x.shape
    assert H % 2 == 0 and W % 2 == 0
    OH, OW = H // 2, W // 2
    neg = jnp.finfo(x.dtype).min
    xp = jnp.pad(x, ((0, 0), (1, 1), (1, 1), (0, 0)), constant_values=neg)
    xe = xp[:, :, 0::2, :]                                    # (N, H+2, OW+1, C)
    xo = xp[:, :, 1::2, :]                                    # (N, H+2, OW+1, C)
    return pl.pallas_call(
        functools.partial(_maxpool3_kernel, ow=OW),
        out_shape=jax.ShapeDtypeStruct((N, OH, OW, C), x.dtype),
        grid_spec=pltpu.PrefetchScalarGridSpec(
            num_scalar_prefetch=0,
            grid=(N, OH, 3),
            in_specs=[pl.BlockSpec((1, 1, OW + 1, C),
                                   lambda n, i, k: (n, 2 * i + k, 0, 0)),
                      pl.BlockSpec((1, 1, OW + 1, C),
                                   lambda n, i, k: (n, 2 * i + k, 0, 0))],
            out_specs=pl.BlockSpec((1, 1, OW, C), lambda n, i, k: (n, i, 0, 0)),
            scratch_shapes=[pltpu.VMEM((OW, C), jnp.float32)]),
        compiler_params=pltpu.CompilerParams(
            dimension_semantics=("parallel", "parallel", "arbitrary")),
    )(xe, xo)


# ---------------------------------------------------------------------------
# Deterministic parameter construction (habitat-style GroupNorm resnet50),
# conv weights prepacked once as bf16 matmul operands:
#   1x1 conv -> (Cin, Cout)       KxK conv -> (KH*KW, Cin, Cout)
# ---------------------------------------------------------------------------
_param_keys = iter(jax.random.split(jax.random.PRNGKey(0), 4096))


def _conv_w(cout, cin, kh, kw):
    k = next(_param_keys)
    fan_in = cin * kh * kw
    w = jax.random.normal(k, (cout, cin, kh, kw),
                          jnp.float32) * (1.0 / math.sqrt(fan_in))
    wt = jnp.transpose(w, (2, 3, 1, 0))                       # (KH, KW, Cin, Cout)
    if kh == 1 and kw == 1:
        return wt.reshape(cin, cout).astype(jnp.bfloat16)
    return wt.reshape(kh * kw, cin, cout).astype(jnp.bfloat16)


def _make_bottleneck(inplanes, planes, stride, downsample):
    p = {"stride": stride,
         "w1": _conv_w(planes, inplanes, 1, 1),
         "g1": jnp.ones(planes, jnp.float32), "b1": jnp.zeros(planes, jnp.float32),
         "w2": _conv_w(planes, planes, 3, 3),
         "g2": jnp.ones(planes, jnp.float32), "b2": jnp.zeros(planes, jnp.float32),
         "w3": _conv_w(planes * 4, planes, 1, 1),
         "g3": jnp.ones(planes * 4, jnp.float32),
         "b3": jnp.zeros(planes * 4, jnp.float32)}
    if downsample:
        p["dw"] = _conv_w(planes * 4, inplanes, 1, 1)
        p["dg"] = jnp.ones(planes * 4, jnp.float32)
        p["db"] = jnp.zeros(planes * 4, jnp.float32)
    return p


def _make_layer(inplanes, planes, n_blocks, stride):
    blocks = []
    needs_ds = stride != 1 or inplanes != planes * 4
    blocks.append(_make_bottleneck(inplanes, planes, stride, needs_ds))
    inplanes = planes * 4
    for _ in range(n_blocks - 1):
        blocks.append(_make_bottleneck(inplanes, planes, 1, False))
    return blocks, inplanes


def make_visual_encoder_params(num_channels, base_planes=32, num_groups=32,
                               spatial_size=128):
    params = {"ngroups": num_groups}
    params["conv1"] = _conv_w(base_planes, num_channels, 7, 7)
    params["gn1_g"] = jnp.ones(base_planes, jnp.float32)
    params["gn1_b"] = jnp.zeros(base_planes, jnp.float32)
    layers, inplanes = [], base_planes
    for planes, n_blocks, stride in [(base_planes, 3, 1),
                                     (base_planes * 2, 4, 2),
                                     (base_planes * 4, 6, 2),
                                     (base_planes * 8, 3, 2)]:
        layer, inplanes = _make_layer(inplanes, planes, n_blocks, stride)
        layers.append(layer)
    params["layers"] = layers
    final_channels = inplanes
    final_spatial_compress = 1.0 / (2 ** 5)
    ncc = int(round(2048 / (spatial_size * final_spatial_compress) ** 2))
    params["num_compression_channels"] = ncc
    params["comp_w"] = _conv_w(ncc, final_channels, 3, 3)
    params["comp_g"] = jnp.ones(ncc, jnp.float32)
    params["comp_b"] = jnp.zeros(ncc, jnp.float32)
    return params


# ---------------------------------------------------------------------------
# Forward pass
# ---------------------------------------------------------------------------
def _bottleneck_fwd(x, p, ngroups):
    identity = x
    out = conv1x1(x, p["w1"])
    out = group_norm(out, p["g1"], p["b1"], num_groups=ngroups, relu=True)
    out = conv2d_spatial(out, p["w2"], stride=p["stride"], padding=1, kh=3, kw=3)
    out = group_norm(out, p["g2"], p["b2"], num_groups=ngroups, relu=True)
    out = conv1x1(out, p["w3"])
    if "dw" in p:
        identity = conv1x1(x, p["dw"], stride=p["stride"])
        identity = group_norm(identity, p["dg"], p["db"],
                              num_groups=ngroups, relu=False)
    # final GroupNorm + residual add + ReLU fused in one kernel
    return group_norm(out, p["g3"], p["b3"], identity,
                      num_groups=ngroups, relu=True)


def visual_encoder_forward(params, x_nchw):
    ngroups = params["ngroups"]
    x = jnp.transpose(x_nchw, (0, 2, 3, 1)).astype(jnp.bfloat16)  # NCHW -> NHWC
    x = avg_pool2(x)                                        # F.avg_pool2d(x, 2)
    # resnet50 stem
    x = conv2d_spatial(x, params["conv1"], stride=2, padding=3, kh=7, kw=7)
    x = group_norm(x, params["gn1_g"], params["gn1_b"],
                   num_groups=ngroups, relu=True)
    x = max_pool3(x)
    # four bottleneck stages
    for layer in params["layers"]:
        for block in layer:
            x = _bottleneck_fwd(x, block, ngroups)
    # compression: conv3x3 -> GroupNorm(1, C) -> ReLU
    x = conv2d_spatial(x, params["comp_w"], stride=1, padding=1, kh=3, kw=3)
    x = group_norm(x, params["comp_g"], params["comp_b"],
                   num_groups=1, relu=True)
    return jnp.transpose(x, (0, 3, 1, 2)).astype(jnp.float32)  # NHWC -> NCHW


# ---------------------------------------------------------------------------
if __name__ == "__main__":
    num_channels, base_planes, num_groups, spatial_size = 4, 8, 2, 32
    params = make_visual_encoder_params(num_channels, base_planes,
                                        num_groups, spatial_size)
    # input spatial 64 (= 2 * spatial_size): after avg_pool2d(2) + /32 resnet
    # compression the final feature map is 1x1.
    x = jax.random.normal(jax.random.PRNGKey(0),
                          (2, num_channels, 64, 64), jnp.float32)   # NCHW
    out = visual_encoder_forward(params, x)
    out = jax.block_until_ready(out)
    expected_c = params["num_compression_channels"]
    assert out.shape == (2, expected_c, 1, 1), out.shape
    assert bool(jnp.all(jnp.isfinite(out)))
    print("KERNEL_OK")
</pallas_src>

<mosaic_0001>
module attributes {stable_mosaic.version = 11 : i64} {
  func.func @_avgpool2_kernel(%arg0: i32, %arg1: memref<2x32x2x4xbf16, #tpu.memory_space<vmem>>, %arg2: memref<1x32x4xbf16, #tpu.memory_space<vmem>>) attributes {dimension_semantics = [#tpu.dimension_semantics<parallel>], iteration_bounds = array<i64: 64>, scalar_prefetch = 0 : i64, scratch_operands = 0 : i64, tpu.core_type = #tpu.core_type<tc>, window_params = [{transform_indices = @transform_0, window_bounds = array<i64: 2, 32, 2, 4>}, {transform_indices = @transform_1, window_bounds = array<i64: 1, 32, 4>}]} {
    %c0 = arith.constant 0 : index
    %c0_0 = arith.constant 0 : index
    %c0_1 = arith.constant 0 : index
    %c0_2 = arith.constant 0 : index
    %0 = vector.load %arg1[%c0, %c0_0, %c0_1, %c0_2] : memref<2x32x2x4xbf16, #tpu.memory_space<vmem>>, vector<2x32x2x4xbf16>
    %1 = arith.extf %0 : vector<2x32x2x4xbf16> to vector<2x32x2x4xf32>
    %2 = vector.extract_strided_slice %1 {offsets = [0, 0, 0, 0], sizes = [1, 32, 2, 4], strides = [1, 1, 1, 1]} : vector<2x32x2x4xf32> to vector<1x32x2x4xf32>
    %3 = vector.shape_cast %2 : vector<1x32x2x4xf32> to vector<32x2x4xf32>
    %4 = vector.extract_strided_slice %1 {offsets = [1, 0, 0, 0], sizes = [1, 32, 2, 4], strides = [1, 1, 1, 1]} : vector<2x32x2x4xf32> to vector<1x32x2x4xf32>
    %5 = vector.shape_cast %4 : vector<1x32x2x4xf32> to vector<32x2x4xf32>
    %6 = arith.addf %3, %5 : vector<32x2x4xf32>
    %7 = vector.extract_strided_slice %6 {offsets = [0, 0, 0], sizes = [32, 1, 4], strides = [1, 1, 1]} : vector<32x2x4xf32> to vector<32x1x4xf32>
    %8 = vector.shape_cast %7 : vector<32x1x4xf32> to vector<32x4xf32>
    %9 = vector.extract_strided_slice %6 {offsets = [0, 1, 0], sizes = [32, 1, 4], strides = [1, 1, 1]} : vector<32x2x4xf32> to vector<32x1x4xf32>
    %10 = vector.shape_cast %9 : vector<32x1x4xf32> to vector<32x4xf32>
    %11 = arith.addf %8, %10 : vector<32x4xf32>
    %cst = arith.constant 2.500000e-01 : f32
    %12 = vector.broadcast %cst : f32 to vector<32x4xf32>
    %13 = arith.mulf %11, %12 : vector<32x4xf32>
    %14 = arith.truncf %13 : vector<32x4xf32> to vector<32x4xbf16>
    %c0_3 = arith.constant 0 : index
    %c0_4 = arith.constant 0 : index
    %c0_5 = arith.constant 0 : index
    %15 = vector.load %arg2[%c0_3, %c0_4, %c0_5] : memref<1x32x4xbf16, #tpu.memory_space<vmem>>, vector<1x32x4xbf16>
    %16 = vector.shape_cast %15 : vector<1x32x4xbf16> to vector<32x4xbf16>
    %17 = vector.shape_cast %14 : vector<32x4xbf16> to vector<1x32x4xbf16>
    tpu.vector_store %arg2[%c0_3, %c0_4, %c0_5], %17 {strides = array<i32>} : memref<1x32x4xbf16, #tpu.memory_space<vmem>>, vector<1x32x4xbf16>,
    return
  }
  func.func @transform_0(%arg0: i32) -> (i32, i32, i32, i32) {
    %c0_i32 = arith.constant 0 : i32
    %c0_i32_0 = arith.constant 0 : i32
    %c0_i32_1 = arith.constant 0 : i32
    %c0_i32_2 = arith.constant 0 : i32
    return %arg0, %c0_i32, %c0_i32_0, %c0_i32_1 : i32, i32, i32, i32
  }
  func.func @transform_1(%arg0: i32) -> (i32, i32, i32) {
    %c0_i32 = arith.constant 0 : i32
    %c0_i32_0 = arith.constant 0 : i32
    %c0_i32_1 = arith.constant 0 : i32
    return %arg0, %c0_i32, %c0_i32_0 : i32, i32, i32
  }
}

</mosaic_0001>

<bundles_post_ra>
// kernel: avg_pool2.1
= control target key start
LH: loop header
LB: loop body
LE: loop exit
PB: predicated region body
PF: predicated region fallthrough
CT: control target
= control target key end

     0   :  { %s896_s6 = smov 0   ;;  %s1461_s0 = inlined_call_operand.vmem [shape: bf16[128,32,2,4], index: 0, kind: input, shape index: {}]   ;;  %s1462_s1 = inlined_call_operand.vmem [shape: bf16[64,32,4], index: 1, kind: output, shape index: {}]  }
   0x1 LB: > { %s902_s7 = sadd.s32 4294967295, %s884_s6   ;;  %p766_p0 = scmp.ge.s32.totalorder %s884_s6, 1  ;;  %s884_s6 = sphi %s896_s6, %s11_s6  }
   0x2   : > { %p88_p1 = scmp.lt.s32.totalorder %s884_s6, 65 }
   0x4   : > { %p89_p2 = pnand %p766_p0, %p88_p1 }
   0x6   : > { %92 = sbr.rel (%p89_p2) target bundleno = 113 (0x71), region = 24 }
   0xd   : > { %s767_s8 = sshll.u32 %s902_s7, 1  ;;  %vm632_vm0 = vcmask 1041409   ;;  %vm635_vm1 = vcmask 1042434   ;;  %vm638_vm2 = vcmask 1043459   ;;  %vm641_vm3 = vcmask 1044484   ;;  %p114_p4 = scmp.lt.s32.totalorder %s902_s7, 63 }
   0xe   : > { %p109_p3 = scmp.lt.s32.totalorder %s767_s8, 127  ;;  %vm644_vm4 = vcmask 1045509   ;;  %vm647_vm5 = vcmask 1046534   ;;  %vm650_vm6 = vcmask 1047559   ;;  %vm702_vm7 = vcmask 27648  }
   0xf   : > { %s1540_s7 = smov (!%p114_p4, %s902_s7), 63 }
  0x10   : > { %s1538_s8 = smov (!%p109_p3, %s767_s8), 127  ;;  %s837_s13 = sshll.u32 %s1540_s7, 4 }
  0x11   : > { %s768_s9 = sshll.u32 %s1538_s8, 5  ;;  %s118_s16 = scalar_lea.vmem %s1462_s1, %s837_s13 }
  0x12   : > { %s910_s12 = scalar_lea.vmem %s1461_s0, %s768_s9 }
  0x13   : > { %v913_v0 = vld [vmem:[%s910_s12] sm:$0x1]  ;;  %v916_v1 = vld [vmem:[%s910_s12 + $0x1] sm:$0x1]  ;;  %v919_v2 = vld [vmem:[%s910_s12 + $0x2] sm:$0x1] }
  0x14   : > { %v922_v3 = vld [vmem:[%s910_s12 + $0x3] sm:$0x1]  ;;  %v925_v4 = vld [vmem:[%s910_s12 + $0x4] sm:$0x1]  ;;  %v928_v5 = vld [vmem:[%s910_s12 + $0x5] sm:$0x1]  ;;  %v183_v15 = vunpack.c.l.bf16 %v913_v0  ;;  %v184_v16 = vunpack.c.l.bf16 %v916_v1  ;;  %v185_v17 = vunpack.c.l.bf16 %v919_v2 }
  0x15   : > { %v931_v6 = vld [vmem:[%s910_s12 + $0x6] sm:$0x1]  ;;  %v934_v7 = vld [vmem:[%s910_s12 + $0x7] sm:$0x1]  ;;  %v937_v8 = vld [vmem:[%s910_s12 + $0x8] sm:$0x1]  ;;  %v186_v18 = vunpack.c.l.bf16 %v922_v3  ;;  %v187_v22 = vunpack.c.l.bf16 %v925_v4  ;;  %v188_v23 = vunpack.c.l.bf16 %v928_v5 }
  0x16   : > { %v940_v9 = vld [vmem:[%s910_s12 + $0x9] sm:$0x1]  ;;  %v943_v10 = vld [vmem:[%s910_s12 + $0xa] sm:$0x1]  ;;  %v946_v11 = vld [vmem:[%s910_s12 + $0xb] sm:$0x1]  ;;  %v1486_v5 = vunpack.c.l.bf16 %v934_v7 }
  0x17   : > { %v949_v12 = vld [vmem:[%s910_s12 + $0xc] sm:$0x1]  ;;  %v952_v13 = vld [vmem:[%s910_s12 + $0xd] sm:$0x1]  ;;  %v955_v14 = vld [vmem:[%s910_s12 + $0xe] sm:$0x1]  ;;  %v1490_v7 = vunpack.c.l.bf16 %v946_v11 }
  0x18   : > { %v962_v19 = vld [vmem:[%s910_s12 + $0xf] sm:$0x1]  ;;  %v965_v20 = vld [vmem:[%s910_s12 + $0x10] sm:$0x1]  ;;  %v968_v21 = vld [vmem:[%s910_s12 + $0x11] sm:$0x1] }
  0x19   : > { %v975_v26 = vld [vmem:[%s910_s12 + $0x12] sm:$0x1]  ;;  %v978_v27 = vld [vmem:[%s910_s12 + $0x13] sm:$0x1]  ;;  %v981_v28 = vld [vmem:[%s910_s12 + $0x14] sm:$0x1]  ;;  %v1495_v11 = vunpack.c.l.bf16 %v965_v20 }
  0x1a   : > { %v988_v33 = vld [vmem:[%s910_s12 + $0x15] sm:$0x1]  ;;  %v991_v34 = vld [vmem:[%s910_s12 + $0x16] sm:$0x1]  ;;  %v994_v35 = vld [vmem:[%s910_s12 + $0x17] sm:$0x1] }
  0x1b   : > { %v1001_v40 = vld [vmem:[%s910_s12 + $0x18] sm:$0x1]  ;;  %v1004_v41 = vld [vmem:[%s910_s12 + $0x19] sm:$0x1]  ;;  %v1007_v42 = vld [vmem:[%s910_s12 + $0x1a] sm:$0x1]  ;;  %v1500_v20 = vunpack.c.l.bf16 %v988_v33 }
  0x1c   : > { %v1014_v47 = vld [vmem:[%s910_s12 + $0x1b] sm:$0x1]  ;;  %v1017_v48 = vld [vmem:[%s910_s12 + $0x1c] sm:$0x1]  ;;  %v1020_v49 = vld [vmem:[%s910_s12 + $0x1d] sm:$0x1]  ;;  %v1509_v33 = vunpack.c.l.bf16 %v1007_v42 }
  0x1d   : > { %v1027_v54 = vld [vmem:[%s910_s12 + $0x1e] sm:$0x1]  ;;  %v1030_v55 = vld [vmem:[%s910_s12 + $0x1f] sm:$0x1]  ;;  %v151_v56 = vld [vmem:[%s910_s12 + $0x20] sm:$0x1] }
  0x1e   : > { %v152_v61 = vld [vmem:[%s910_s12 + $0x21] sm:$0x1]  ;;  %v153_v62 = vld [vmem:[%s910_s12 + $0x22] sm:$0x1]  ;;  %v154_v63 = vld [vmem:[%s910_s12 + $0x23] sm:$0x1]  ;;  %v215_v57 = vunpack.c.l.bf16 %v151_v56  ;;  %v1519_v42 = vunpack.c.l.bf16 %v1030_v55 }
  0x1f   : > { %v155_v58 = vld [vmem:[%s910_s12 + $0x24] sm:$0x1]  ;;  %v156_v59 = vld [vmem:[%s910_s12 + $0x25] sm:$0x1]  ;;  %v157_v50 = vld [vmem:[%s910_s12 + $0x26] sm:$0x1]  ;;  %v216_v46 = vunpack.c.l.bf16 %v152_v61  ;;  %v217_v45 = vunpack.c.l.bf16 %v153_v62  ;;  %v218_v44 = vunpack.c.l.bf16 %v154_v63 }
  0x20   : > { %v158_v43 = vld [vmem:[%s910_s12 + $0x27] sm:$0x1]  ;;  %v159_v53 = vld [vmem:[%s910_s12 + $0x28] sm:$0x1]  ;;  %v160_v52 = vld [vmem:[%s910_s12 + $0x29] sm:$0x1]  ;;  %v219_v39 = vunpack.c.l.bf16 %v155_v58  ;;  %v220_v51 = vunpack.c.l.bf16 %v156_v59  ;;  %v221_v38 = vunpack.c.l.bf16 %v157_v50  ;;  %v1052_v56 = vadd.f32 %v215_v57, %v183_v15 }
  0x21   : > { %v161_v37 = vld [vmem:[%s910_s12 + $0x2a] sm:$0x1]  ;;  %v162_v61 = vld [vmem:[%s910_s12 + $0x2b] sm:$0x1]  ;;  %v163_v62 = vld [vmem:[%s910_s12 + $0x2c] sm:$0x1]  ;;  %v222_v60 = vunpack.c.l.bf16 %v158_v43  ;;  %v223_v63 = vunpack.c.l.bf16 %v159_v53  ;;  %v224_v36 = vunpack.c.l.bf16 %v160_v52  ;;  %v1059_v32 = vadd.f32 %v216_v46, %v184_v16 }
  0x22   : > { %1479 = vst [vmem:[#allocation2_spill] sm:$0xff] %v1052_v56  ;;  %v164_v50 = vld [vmem:[%s910_s12 + $0x2d] sm:$0x1]  ;;  %v165_v0 = vld [vmem:[%s910_s12 + $0x2e] sm:$0x1]  ;;  %v225_v15 = vunpack.c.l.bf16 %v161_v37  ;;  %v226_v57 = vunpack.c.l.bf16 %v162_v61  ;;  %v227_v59 = vunpack.c.l.bf16 %v163_v62  ;;  %v1066_v31 = vadd.f32 %v217_v45, %v185_v17 }
  0x23   : > { %1480 = vst [vmem:[#allocation3_spill] sm:$0xff] %v1059_v32  ;;  %v166_v58 = vld [vmem:[%s910_s12 + $0x2f] sm:$0x1]  ;;  %v167_v43 = vld [vmem:[%s910_s12 + $0x30] sm:$0x1]  ;;  %v228_v16 = vunpack.c.l.bf16 %v164_v50  ;;  %v229_v46 = vunpack.c.l.bf16 %v165_v0  ;;  %v1073_v30 = vadd.f32 %v218_v44, %v186_v18  ;;  %v1080_v29 = vadd.f32 %v219_v39, %v187_v22 }
  0x24   : > { %1481 = vst [vmem:[#allocation4_spill] sm:$0xff] %v1066_v31  ;;  %v168_v1 = vld [vmem:[%s910_s12 + $0x31] sm:$0x1]  ;;  %v169_v52 = vld [vmem:[%s910_s12 + $0x32] sm:$0x1]  ;;  %v230_v53 = vunpack.c.l.bf16 %v166_v58  ;;  %v231_v17 = vunpack.c.l.bf16 %v167_v43  ;;  %v1087_v25 = vadd.f32 %v220_v51, %v188_v23  ;;  %v1485_v39 = vunpack.c.l.bf16 %v931_v6 }
  0x25   : > { %1482 = vst [vmem:[#allocation5_spill] sm:$0xff] %v1073_v30  ;;  %v170_v37 = vld [vmem:[%s910_s12 + $0x33] sm:$0x1]  ;;  %v171_v2 = vld [vmem:[%s910_s12 + $0x34] sm:$0x1]  ;;  %v232_v45 = vunpack.c.l.bf16 %v168_v1  ;;  %v233_v62 = vunpack.c.l.bf16 %v169_v52  ;;  %1483 = vst [vmem:[#allocation6_spill] sm:$0xff] %v1080_v29  ;;  %v1101_v23 = vadd.f32 %v222_v60, %v1486_v5  ;;  %v1118_v60 = vadd.f32 %v226_v57, %v1490_v7 }
  0x26   : > { %v172_v61 = vld [vmem:[%s910_s12 + $0x35] sm:$0x1]  ;;  %v173_v50 = vld [vmem:[%s910_s12 + $0x36] sm:$0x1]  ;;  %v174_v3 = vld [vmem:[%s910_s12 + $0x37] sm:$0x1]  ;;  %v234_v18 = vunpack.c.l.bf16 %v170_v37  ;;  %v235_v44 = vunpack.c.l.bf16 %v171_v2  ;;  %v1094_v29 = vadd.f32 %v221_v38, %v1485_v39  ;;  %v1488_v38 = vunpack.c.l.bf16 %v940_v9 }
  0x27   : > { %v175_v0 = vld [vmem:[%s910_s12 + $0x38] sm:$0x1]  ;;  %v236_v58 = vunpack.c.l.bf16 %v172_v61  ;;  %1484 = vst [vmem:[#allocation7_spill] sm:$0xff] %v1087_v25  ;;  %v176_v43 = vld [vmem:[%s910_s12 + $0x39] sm:$0x1]  ;;  %v237_v4 = vunpack.c.l.bf16 %v173_v50  ;;  %v238_v24 = vunpack.c.l.bf16 %v174_v3  ;;  %v1487_v3 = vunpack.c.l.bf16 %v937_v8 }
  0x28   : > { %v177_v1 = vld [vmem:[%s910_s12 + $0x3a] sm:$0x1]  ;;  %v178_v52 = vld [vmem:[%s910_s12 + $0x3b] sm:$0x1]  ;;  %v239_v22 = vunpack.c.l.bf16 %v175_v0  ;;  %v179_v30 = vld [vmem:[%s910_s12 + $0x3c] sm:$0x1]  ;;  %v240_v2 = vunpack.c.l.bf16 %v176_v43  ;;  %v1110_v39 = vadd.f32 %v224_v36, %v1488_v38  ;;  %v1489_v43 = vunpack.c.l.bf16 %v943_v10 }
  0x29   : > { %v180_v31 = vld [vmem:[%s910_s12 + $0x3d] sm:$0x1]  ;;  %v181_v37 = vld [vmem:[%s910_s12 + $0x3e] sm:$0x1]  ;;  %v241_v61 = vunpack.c.l.bf16 %v177_v1  ;;  %v242_v32 = vunpack.c.l.bf16 %v178_v52  ;;  %v182_v51 = vld [vmem:[%s910_s12 + $0x3f] sm:$0x1]  ;;  %v243_v25 = vunpack.c.l.bf16 %v179_v30  ;;  %v1106_v0 = vadd.f32 %v223_v63, %v1487_v3 }
  0x2a   : > { %v244_v56 = vunpack.c.l.bf16 %v180_v31  ;;  %v245_v50 = vunpack.c.l.bf16 %v181_v37  ;;  %v246_v6 = vunpack.c.l.bf16 %v182_v51  ;;  %v1114_v1 = vadd.f32 %v225_v15, %v1489_v43 }
  0x2b   : > { %v1491_v30 = vunpack.c.l.bf16 %v949_v12  ;;  %v1492_v8 = vunpack.c.l.bf16 %v952_v13  ;;  %v1493_v9 = vunpack.c.l.bf16 %v955_v14  ;;  %v1494_v10 = vunpack.c.l.bf16 %v962_v19  ;;  %v1523_v5 = vld [vmem:[#allocation4_spill] sm:$0xff] }
  0x2c   : > { %v1138_v57 = vadd.f32 %v231_v17, %v1495_v11  ;;  %v1496_v12 = vunpack.c.l.bf16 %v968_v21  ;;  %v1497_v13 = vunpack.c.l.bf16 %v975_v26  ;;  %v1498_v14 = vunpack.c.l.bf16 %v978_v27  ;;  %v1525_v3 = vld [vmem:[#allocation6_spill] sm:$0xff] }
  0x2d   : > { %v1122_v31 = vadd.f32 %v227_v59, %v1491_v30  ;;  %v1126_v63 = vadd.f32 %v228_v16, %v1492_v8  ;;  %v1130_v36 = vadd.f32 %v229_v46, %v1493_v9  ;;  %v1134_v15 = vadd.f32 %v230_v53, %v1494_v10 }
  0x2e   : > { %v1142_v59 = vadd.f32 %v232_v45, %v1496_v12  ;;  %v1146_v16 = vadd.f32 %v233_v62, %v1497_v13  ;;  %v1150_v46 = vadd.f32 %v234_v18, %v1498_v14  ;;  %v1499_v19 = vunpack.c.l.bf16 %v981_v28 }
  0x2f   : > { %v1158_v17 = vadd.f32 %v236_v58, %v1500_v20  ;;  %v1501_v21 = vunpack.c.l.bf16 %v991_v34  ;;  %v1503_v26 = vunpack.c.l.bf16 %v994_v35  ;;  %v1505_v27 = vunpack.c.l.bf16 %v1001_v40 }
  0x30   : > { %v1154_v53 = vadd.f32 %v235_v44, %v1499_v19  ;;  %v1507_v28 = vunpack.c.l.bf16 %v1004_v41  ;;  %v1178_v58 = vadd.f32 %v241_v61, %v1509_v33  ;;  %v1511_v34 = vunpack.c.l.bf16 %v1014_v47 }
  0x31   : > { %v1162_v45 = vadd.f32 %v237_v4, %v1501_v21  ;;  %v1166_v62 = vadd.f32 %v238_v24, %v1503_v26  ;;  %v1170_v18 = vadd.f32 %v239_v22, %v1505_v27  ;;  %v1513_v35 = vunpack.c.l.bf16 %v1017_v48 }
  0x32   : > { %v1174_v44 = vadd.f32 %v240_v2, %v1507_v28  ;;  %1510 = vst [vmem:[#allocation12_spill] sm:$0xff] %v1178_v58  ;;  %v1182_v52 = vadd.f32 %v242_v32, %v1511_v34  ;;  %v1515_v40 = vunpack.c.l.bf16 %v1020_v49  ;;  %v1517_v41 = vunpack.c.l.bf16 %v1027_v54  ;;  %v1521_v2 = vld [vmem:[#allocation2_spill] sm:$0xff]  ;;  %v1522_v32 = vld [vmem:[#allocation3_spill] sm:$0xff] }
  0x33   : > { %1502 = vst [vmem:[#allocation8_spill] sm:$0xff] %v1162_v45  ;;  %1504 = vst [vmem:[#allocation9_spill] sm:$0xff] %v1166_v62  ;;  %v1186_v24 = vadd.f32 %v243_v25, %v1513_v35  ;;  %v1198_v37 = vadd.f32 %v246_v6, %v1519_v42  ;;  %v771_v47 = vrot.slane %v1521_v2, 9  ;;  %v772_v61 = vrot.slane %v1522_v32, 9  ;;  %v1524_v25 = vld [vmem:[#allocation5_spill] sm:$0xff] }
  0x34   : > { %1506 = vst [vmem:[#allocation10_spill] sm:$0xff] %v1170_v18  ;;  %1508 = vst [vmem:[#allocation11_spill] sm:$0xff] %v1174_v44  ;;  %v1190_v4 = vadd.f32 %v244_v56, %v1515_v40  ;;  %v1194_v22 = vadd.f32 %v245_v50, %v1517_v41  ;;  %v773_v48 = vrot.slane %v1523_v5, 9  ;;  %v774_v51 = vrot.slane %v1524_v25, 9  ;;  %v1526_v56 = vld [vmem:[#allocation7_spill] sm:$0xff] }
  0x35   : > { %1512 = vst [vmem:[#allocation13_spill] sm:$0xff] %v1182_v52  ;;  %1514 = vst [vmem:[#allocation14_spill] sm:$0xff] %v1186_v24  ;;  %v775_v49 = vrot.slane %v1525_v3, 9  ;;  %v776_v38 = vrot.slane %v1526_v56, 9  ;;  %v777_v54 = vrot.slane %v1094_v29, 9  ;;  %v778_v50 = vrot.slane %v1101_v23, 9 }
  0x36   : > { %1516 = vst [vmem:[#allocation15_spill] sm:$0xff] %v1190_v4  ;;  %1518 = vst [vmem:[#allocation16_spill] sm:$0xff] %v1194_v22  ;;  %v779_v55 = vrot.slane %v1106_v0, 9  ;;  %v780_v6 = vrot.slane %v1110_v39, 9  ;;  %v781_v43 = vrot.slane %v1114_v1, 9  ;;  %v782_v7 = vrot.slane %v1118_v60, 9 }
  0x37   : > { %1520 = vst [vmem:[#allocation17_spill] sm:$0xff] %v1198_v37  ;;  %v783_v30 = vrot.slane %v1122_v31, 9  ;;  %v784_v8 = vrot.slane %v1126_v63, 9  ;;  %v785_v9 = vrot.slane %v1130_v36, 9  ;;  %v786_v10 = vrot.slane %v1134_v15, 9 }
  0x38   : > { %v787_v11 = vrot.slane %v1138_v57, 9  ;;  %v788_v12 = vrot.slane %v1142_v59, 9  ;;  %v789_v13 = vrot.slane %v1146_v16, 9  ;;  %v790_v14 = vrot.slane %v1150_v46, 9 }
  0x39   : > { %v791_v19 = vrot.slane %v1154_v53, 9  ;;  %v792_v20 = vrot.slane %v1158_v17, 9  ;;  %v793_v21 = vrot.slane %v1162_v45, 9  ;;  %v794_v26 = vrot.slane %v1166_v62, 9 }
  0x3a   : > { %v795_v27 = vrot.slane %v1170_v18, 9  ;;  %v796_v28 = vrot.slane %v1174_v44, 9  ;;  %v797_v33 = vrot.slane %v1178_v58, 9  ;;  %v798_v34 = vrot.slane %v1182_v52, 9 }
  0x3b   : > { %v799_v35 = vrot.slane %v1186_v24, 9  ;;  %v800_v40 = vrot.slane %v1190_v4, 9  ;;  %v801_v41 = vrot.slane %v1194_v22, 9  ;;  %v802_v42 = vrot.slane %v1198_v37, 9 }
  0x3c   : > { %v407_v45 = vadd.f32 %v771_v47, %v1521_v2  ;;  %v408_v62 = vadd.f32 %v772_v61, %v1522_v32  ;;  %v409_v18 = vadd.f32 %v773_v48, %v1523_v5  ;;  %v410_v44 = vadd.f32 %v774_v51, %v1524_v25  ;;  %v1527_v25 = vld [vmem:[#allocation8_spill] sm:$0xff]  ;;  %v1528_v51 = vld [vmem:[#allocation9_spill] sm:$0xff] }
  0x3d   : > { %v411_v58 = vadd.f32 %v775_v49, %v1525_v3  ;;  %v412_v52 = vadd.f32 %v776_v38, %v1526_v56  ;;  %v413_v24 = vadd.f32 %v777_v54, %v1094_v29  ;;  %v414_v4 = vadd.f32 %v778_v50, %v1101_v23  ;;  %v1529_v3 = vld [vmem:[#allocation10_spill] sm:$0xff]  ;;  %v1530_v49 = vld [vmem:[#allocation11_spill] sm:$0xff]  ;;  %v1531_v56 = vld [vmem:[#allocation12_spill] sm:$0xff] }
  0x3e   : > { %v415_v22 = vadd.f32 %v779_v55, %v1106_v0  ;;  %v416_v37 = vadd.f32 %v780_v6, %v1110_v39  ;;  %v417_v2 = vadd.f32 %v781_v43, %v1114_v1  ;;  %v418_v47 = vadd.f32 %v782_v7, %v1118_v60  ;;  %v1532_v38 = vld [vmem:[#allocation13_spill] sm:$0xff]  ;;  %v1533_v54 = vld [vmem:[#allocation14_spill] sm:$0xff]  ;;  %v1534_v50 = vld [vmem:[#allocation15_spill] sm:$0xff] }
  0x3f   : > { %v419_v32 = vadd.f32 %v783_v30, %v1122_v31  ;;  %v420_v61 = vadd.f32 %v784_v8, %v1126_v63  ;;  %v421_v5 = vadd.f32 %v785_v9, %v1130_v36  ;;  %v422_v48 = vadd.f32 %v786_v10, %v1134_v15  ;;  %v1535_v55 = vld [vmem:[#allocation16_spill] sm:$0xff]  ;;  %v1536_v6 = vld [vmem:[#allocation17_spill] sm:$0xff] }
  0x40   : > { %v423_v29 = vadd.f32 %v787_v11, %v1138_v57  ;;  %v424_v23 = vadd.f32 %v788_v12, %v1142_v59  ;;  %v425_v0 = vadd.f32 %v789_v13, %v1146_v16  ;;  %v426_v39 = vadd.f32 %v790_v14, %v1150_v46 }
  0x41   : > { %v427_v1 = vadd.f32 %v791_v19, %v1154_v53  ;;  %v428_v60 = vadd.f32 %v792_v20, %v1158_v17  ;;  %v429_v31 = vadd.f32 %v793_v21, %v1527_v25  ;;  %v430_v63 = vadd.f32 %v794_v26, %v1528_v51 }
  0x42   : > { %v431_v36 = vadd.f32 %v795_v27, %v1529_v3  ;;  %v432_v15 = vadd.f32 %v796_v28, %v1530_v49  ;;  %v433_v57 = vadd.f32 %v797_v33, %v1531_v56  ;;  %v434_v59 = vadd.f32 %v798_v34, %v1532_v38 }
  0x43   : > { %v435_v16 = vadd.f32 %v799_v35, %v1533_v54  ;;  %v436_v46 = vadd.f32 %v800_v40, %v1534_v50  ;;  %v437_v53 = vadd.f32 %v801_v41, %v1535_v55  ;;  %v438_v17 = vadd.f32 %v802_v42, %v1536_v6 }
  0x44   : > { %v1264_v43 = vmul.f32 0.25, %v407_v45  ;;  %v1266_v7 = vmul.f32 0.25, %v408_v62  ;;  %v1268_v30 = vmul.f32 0.25, %v409_v18  ;;  %v1270_v8 = vmul.f32 0.25, %v410_v44 }
  0x45   : > { %v1272_v9 = vmul.f32 0.25, %v411_v58  ;;  %v1274_v10 = vmul.f32 0.25, %v412_v52  ;;  %v1276_v11 = vmul.f32 0.25, %v413_v24  ;;  %v1278_v12 = vmul.f32 0.25, %v414_v4 }
  0x46   : > { %v1280_v13 = vmul.f32 0.25, %v415_v22  ;;  %v1282_v14 = vmul.f32 0.25, %v416_v37  ;;  %v1284_v45 = vmul.f32 0.25, %v417_v2  ;;  %v1286_v62 = vmul.f32 0.25, %v418_v47 }
  0x47   : > { %v1288_v18 = vmul.f32 0.25, %v419_v32  ;;  %v1290_v44 = vmul.f32 0.25, %v420_v61  ;;  %v1292_v58 = vmul.f32 0.25, %v421_v5  ;;  %v1294_v52 = vmul.f32 0.25, %v422_v48 }
  0x48   : > { %v1296_v24 = vmul.f32 0.25, %v423_v29  ;;  %v1298_v4 = vmul.f32 0.25, %v424_v23  ;;  %v1300_v22 = vmul.f32 0.25, %v425_v0  ;;  %v1302_v37 = vmul.f32 0.25, %v426_v39 }
  0x49   : > { %v1304_v19 = vmul.f32 0.25, %v427_v1  ;;  %v1306_v20 = vmul.f32 0.25, %v428_v60  ;;  %v1308_v21 = vmul.f32 0.25, %v429_v31  ;;  %v1310_v26 = vmul.f32 0.25, %v430_v63 }
  0x4a   : > { %v1312_v27 = vmul.f32 0.25, %v431_v36  ;;  %v1314_v28 = vmul.f32 0.25, %v432_v15  ;;  %v1316_v33 = vmul.f32 0.25, %v433_v57  ;;  %v1318_v34 = vmul.f32 0.25, %v434_v59 }
  0x4b   : > { %v1320_v35 = vmul.f32 0.25, %v435_v16  ;;  %v1322_v40 = vmul.f32 0.25, %v436_v46  ;;  %v1324_v41 = vmul.f32 0.25, %v437_v53  ;;  %v1326_v42 = vmul.f32 0.25, %v438_v17 }
  0x4c   : > { %v838_v2 = vpack.c.bf16 %v1264_v43, %v1264_v43  ;;  %v839_v47 = vpack.c.bf16 %v1266_v7, %v1266_v7  ;;  %v840_v32 = vpack.c.bf16 %v1268_v30, %v1268_v30  ;;  %v841_v61 = vpack.c.bf16 %v1270_v8, %v1270_v8 }
  0x4d   : > { %v842_v5 = vpack.c.bf16 %v1272_v9, %v1272_v9  ;;  %v843_v48 = vpack.c.bf16 %v1274_v10, %v1274_v10  ;;  %v844_v29 = vpack.c.bf16 %v1276_v11, %v1276_v11  ;;  %v845_v23 = vpack.c.bf16 %v1278_v12, %v1278_v12 }
  0x4e   : > { %v846_v0 = vpack.c.bf16 %v1280_v13, %v1280_v13  ;;  %v847_v39 = vpack.c.bf16 %v1282_v14, %v1282_v14  ;;  %v848_v1 = vpack.c.bf16 %v1284_v45, %v1284_v45  ;;  %v849_v60 = vpack.c.bf16 %v1286_v62, %v1286_v62 }
  0x4f   : > { %v850_v25 = vpack.c.bf16 %v1288_v18, %v1288_v18  ;;  %v851_v31 = vpack.c.bf16 %v1290_v44, %v1290_v44  ;;  %v852_v51 = vpack.c.bf16 %v1292_v58, %v1292_v58  ;;  %v853_v63 = vpack.c.bf16 %v1294_v52, %v1294_v52 }
  0x50   : > { %v854_v3 = vpack.c.bf16 %v1296_v24, %v1296_v24  ;;  %v855_v36 = vpack.c.bf16 %v1298_v4, %v1298_v4  ;;  %v856_v49 = vpack.c.bf16 %v1300_v22, %v1300_v22  ;;  %v857_v15 = vpack.c.bf16 %v1302_v37, %v1302_v37 }
  0x51   : > { %v858_v56 = vpack.c.bf16 %v1304_v19, %v1304_v19  ;;  %v859_v57 = vpack.c.bf16 %v1306_v20, %v1306_v20  ;;  %v860_v38 = vpack.c.bf16 %v1308_v21, %v1308_v21  ;;  %v861_v59 = vpack.c.bf16 %v1310_v26, %v1310_v26 }
  0x52   : > { %v862_v54 = vpack.c.bf16 %v1312_v27, %v1312_v27  ;;  %v863_v16 = vpack.c.bf16 %v1314_v28, %v1314_v28  ;;  %v864_v50 = vpack.c.bf16 %v1316_v33, %v1316_v33  ;;  %v865_v46 = vpack.c.bf16 %v1318_v34, %v1318_v34 }
  0x53   : > { %v866_v55 = vpack.c.bf16 %v1320_v35, %v1320_v35  ;;  %v867_v53 = vpack.c.bf16 %v1322_v40, %v1322_v40  ;;  %v868_v6 = vpack.c.bf16 %v1324_v41, %v1324_v41  ;;  %v869_v17 = vpack.c.bf16 %v1326_v42, %v1326_v42 }
  0x54   : > { %v599_v43 = vunpack.c.l.b16 %v838_v2  ;;  %v600_v7 = vunpack.c.l.b16 %v839_v47  ;;  %v601_v30 = vunpack.c.l.b16 %v840_v32  ;;  %v602_v8 = vunpack.c.l.b16 %v841_v61 }
  0x55   : > { %v603_v9 = vunpack.c.l.b16 %v842_v5  ;;  %v604_v10 = vunpack.c.l.b16 %v843_v48  ;;  %v1392_v11 = vunpack.c.l.b16 %v844_v29  ;;  %v1394_v12 = vunpack.c.l.b16 %v845_v23 }
  0x56   : > { %v607_v13 = vunpack.c.l.b16 %v846_v0  ;;  %v608_v14 = vunpack.c.l.b16 %v847_v39  ;;  %v609_v45 = vunpack.c.l.b16 %v848_v1  ;;  %v610_v62 = vunpack.c.l.b16 %v849_v60 }
  0x57   : > { %v611_v18 = vunpack.c.l.b16 %v850_v25  ;;  %v612_v44 = vunpack.c.l.b16 %v851_v31  ;;  %v613_v58 = vunpack.c.l.b16 %v852_v51  ;;  %v614_v52 = vunpack.c.l.b16 %v853_v63 }
  0x58   : > { %v615_v24 = vunpack.c.l.b16 %v854_v3  ;;  %v616_v4 = vunpack.c.l.b16 %v855_v36  ;;  %v617_v22 = vunpack.c.l.b16 %v856_v49  ;;  %v618_v37 = vunpack.c.l.b16 %v857_v15 }
  0x59   : > { %v619_v19 = vunpack.c.l.b16 %v858_v56  ;;  %v620_v20 = vunpack.c.l.b16 %v859_v57  ;;  %v621_v21 = vunpack.c.l.b16 %v860_v38  ;;  %v1396_v26 = vunpack.c.l.b16 %v861_v59 }
  0x5a   : > { %v623_v27 = vunpack.c.l.b16 %v862_v54  ;;  %v624_v28 = vunpack.c.l.b16 %v863_v16  ;;  %v625_v33 = vunpack.c.l.b16 %v864_v50  ;;  %v1398_v34 = vunpack.c.l.b16 %v865_v46 }
  0x5b   : > { %v1400_v35 = vunpack.c.l.b16 %v866_v55  ;;  %v1402_v40 = vunpack.c.l.b16 %v867_v53  ;;  %v1404_v41 = vunpack.c.l.b16 %v868_v6  ;;  %v1406_v42 = vunpack.c.l.b16 %v869_v17 }
  0x5c   : > { %v631_v2 = vrot.slane %v600_v7, 7  ;;  %v634_v47 = vrot.slane %v601_v30, 6  ;;  %v637_v32 = vrot.slane %v602_v8, 5  ;;  %v640_v61 = vrot.slane %v603_v9, 4 }
  0x5d   : > { %v643_v5 = vrot.slane %v604_v10, 3  ;;  %v646_v48 = vrot.slane %v1392_v11, 2  ;;  %v649_v29 = vrot.slane %v1394_v12, 1  ;;  %v652_v23 = vrot.slane %v608_v14, 7 }
  0x5e   : > { %v633_v0 = vsel %vm632_vm0, %v631_v2, %v599_v43  ;;  %v654_v39 = vrot.slane %v609_v45, 6  ;;  %v656_v1 = vrot.slane %v610_v62, 5  ;;  %v658_v60 = vrot.slane %v611_v18, 4 }
  0x5f   : > { %v636_v25 = vsel %vm635_vm1, %v634_v47, %v633_v0  ;;  %v653_v31 = vsel %vm632_vm0, %v652_v23, %v607_v13  ;;  %v660_v51 = vrot.slane %v612_v44, 3  ;;  %v662_v63 = vrot.slane %v613_v58, 2 }
  0x60   : > { %v639_v3 = vsel %vm638_vm2, %v637_v32, %v636_v25  ;;  %v655_v36 = vsel %vm635_vm1, %v654_v39, %v653_v31  ;;  %v664_v49 = vrot.slane %v614_v52, 1  ;;  %v666_v15 = vrot.slane %v616_v4, 7 }
  0x61   : > { %v642_v56 = vsel %vm641_vm3, %v640_v61, %v639_v3  ;;  %v657_v57 = vsel %vm638_vm2, %v656_v1, %v655_v36  ;;  %v668_v38 = vrot.slane %v617_v22, 6  ;;  %v670_v59 = vrot.slane %v618_v37, 5 }
  0x62   : > { %v645_v54 = vsel %vm644_vm4, %v643_v5, %v642_v56  ;;  %v659_v16 = vsel %vm641_vm3, %v658_v60, %v657_v57  ;;  %v667_v50 = vsel %vm632_vm0, %v666_v15, %v615_v24  ;;  %v672_v46 = vrot.slane %v619_v19, 4 }
  0x63   : > { %v648_v55 = vsel %vm647_vm5, %v646_v48, %v645_v54  ;;  %v661_v53 = vsel %vm644_vm4, %v660_v51, %v659_v16  ;;  %v669_v6 = vsel %vm635_vm1, %v668_v38, %v667_v50  ;;  %v674_v17 = vrot.slane %v620_v20, 3 }
  0x64   : > { %v651_v43 = vsel %vm650_vm6, %v649_v29, %v648_v55  ;;  %v663_v7 = vsel %vm647_vm5, %v662_v63, %v661_v53  ;;  %v671_v30 = vsel %vm638_vm2, %v670_v59, %v669_v6  ;;  %v676_v8 = vrot.slane %v621_v21, 2 }
  0x65   : > { %v665_v9 = vsel %vm650_vm6, %v664_v49, %v663_v7  ;;  %v673_v10 = vsel %vm641_vm3, %v672_v46, %v671_v30  ;;  %v678_v11 = vrot.slane %v1396_v26, 1  ;;  %v680_v12 = vrot.slane %v624_v28, 7 }
  0x66   : > { %v675_v13 = vsel %vm644_vm4, %v674_v17, %v673_v10  ;;  %v682_v14 = vrot.slane %v625_v33, 6  ;;  %v684_v45 = vrot.slane %v1398_v34, 5  ;;  %v686_v62 = vrot.slane %v1400_v35, 4 }
  0x67   : > { %v677_v18 = vsel %vm647_vm5, %v676_v8, %v675_v13  ;;  %v681_v44 = vsel %vm632_vm0, %v680_v12, %v623_v27  ;;  %v688_v58 = vrot.slane %v1402_v40, 3  ;;  %v690_v4 = vrot.slane %v1404_v41, 2 }
  0x68   : > { %v679_v52 = vsel %vm650_vm6, %v678_v11, %v677_v18  ;;  %v683_v24 = vsel %vm635_vm1, %v682_v14, %v681_v44  ;;  %v694_v22 = vpack.c.b16 %v651_v43, %v651_v43  ;;  %v692_v19 = vrot.slane %v1406_v42, 1 }
  0x69   : > { %v685_v37 = vsel %vm638_vm2, %v684_v45, %v683_v24  ;;  %v695_v20 = vpack.c.b16 %v665_v9, %v665_v9  ;;  %v696_v21 = vpack.c.b16 %v679_v52, %v679_v52 }
  0x6a   : > { %v687_v26 = vsel %vm641_vm3, %v686_v62, %v685_v37  ;;  %703 = vst.msk [vmem:[%s118_s16] sm:$0xf] %vm702_vm7, %v694_v22 }
  0x6b   : > { %v689_v27 = vsel %vm644_vm4, %v688_v58, %v687_v26  ;;  %704 = vst.msk [vmem:[%s118_s16 + $0x4] sm:$0xf] %vm702_vm7, %v695_v20  ;;  %705 = vst.msk [vmem:[%s118_s16 + $0x8] sm:$0xf] %vm702_vm7, %v696_v21 }
  0x6c   : > { %v691_v28 = vsel %vm647_vm5, %v690_v4, %v689_v27 }
  0x6d   : > { %v693_v33 = vsel %vm650_vm6, %v692_v19, %v691_v28 }
  0x6e   : > { %v697_v34 = vpack.c.b16 %v693_v33, %v693_v33 }
  0x70   : > { %706 = vst.msk [vmem:[%s118_s16 + $0xc] sm:$0xf] %vm702_vm7, %v697_v34 }
  0x71 PF: > { %s11_s6 = sadd.s32 1, %s884_s6  }
  0x72   : > { %p8_p5 = scmp.ge.s32.totalorder %s11_s6, 66  }
  0x74   :  { %10 = sbr.rel (!%p8_p5) target bundleno = 1 (0x1), region = 54 }

</bundles_post_ra>
